<compile_context>
chip_gen: v5e
topology: v5e:2x2
jax: 0.10.0
libtpu: 0.0.40
codegen_flags: <defaults>
</compile_context>

<pallas_src>
import functools

import jax
import jax.numpy as jnp
from jax.experimental import pallas as pl
from jax.experimental.pallas import tpu as pltpu


def _matriz_cerebral_kernel(a_ref, w_ref, x_ref, o_ref, *, tk, x_k_resident):
    """One (i, j, k) grid step of relu((A*W) @ x).

    The output block index (i, j) is constant across the reduction axis k, so
    o_ref stays VMEM-resident across k and doubles as the f32 accumulator.
    """
    k = pl.program_id(2)

    @pl.when(k == 0)
    def _():
        o_ref[...] = jnp.zeros_like(o_ref)

    # Elementwise gate (f32 math on the VPU), bf16 operands for the MXU,
    # f32 accumulation.
    conexoes = (
        a_ref[...].astype(jnp.float32) * w_ref[...].astype(jnp.float32)
    ).astype(jnp.bfloat16)

    if x_k_resident:
        # x is fully K-resident in VMEM; slice the current reduction chunk.
        start = pl.multiple_of(k * tk, tk)
        x_blk = x_ref[pl.ds(start, tk), :]
    else:
        x_blk = x_ref[...]

    o_ref[...] += jnp.dot(conexoes, x_blk, preferred_element_type=jnp.float32)

    @pl.when(k == pl.num_programs(2) - 1)
    def _():
        o_ref[...] = jnp.maximum(o_ref[...], 0.0)


def _round_up(x, m):
    return ((x + m - 1) // m) * m


def _pad_cast(arr, shape, dtype):
    arr = arr.astype(dtype)
    if arr.shape == shape:
        return arr
    return jnp.zeros(shape, dtype).at[: arr.shape[0], : arr.shape[1]].set(arr)


def _tpu_vmem_and_cores():
    """Best-effort hardware query; conservative defaults if unavailable."""
    vmem = 64 * 1024 * 1024  # v7x-conservative; v5e/v6e have 128 MiB.
    cores = 1                # v5e/v6e are single-TC; v7x has 2.
    try:
        info = pltpu.get_tpu_info()
        cap = getattr(info, "vmem_capacity_bytes", None)
        if isinstance(cap, int) and cap > 0:
            vmem = cap
        for attr in ("num_cores", "tensorcore_count", "num_tensorcores",
                     "cores_per_chip", "core_count"):
            v = getattr(info, attr, None)
            if isinstance(v, int) and v > 0:
                cores = v
                break
    except Exception:
        pass
    return vmem, cores


def _pick_tile(dim, candidates, full_cap):
    """Full dim if small enough, else the (largest) candidate minimizing padding."""
    if dim <= full_cap:
        return dim
    best, best_pad = None, None
    for c in candidates:  # descending: first minimal-pad candidate = largest tile
        pad = _round_up(dim, c) - dim
        if best is None or pad < best_pad:
            best, best_pad = c, pad
    return best


def _vmem_needed(tm, tk, tn, x_rows):
    """Approx VMEM footprint: double-buffered bf16 A/W/x tiles + f32 out tile."""
    return (2 * 2 * (tm * tk * 2)       # A and W tiles (bf16, double-buffered)
            + 2 * (x_rows * tn * 2)     # x tile (bf16, double-buffered)
            + 2 * (tm * tn * 4))        # output tile (f32 accumulator)


def matriz_cerebral_forward(A, W, x):
    """relu((A * W) @ x) — A, W: (N, K); x: (K, B) -> (N, B)."""
    N, K = W.shape
    assert A.shape == (N, K)
    K2, B = x.shape
    assert K2 == K

    vmem_cap, n_cores = _tpu_vmem_and_cores()
    budget = int(0.6 * vmem_cap)

    # Minimal hardware-aligned dims (bf16 operands: 16-sublane / 128-lane).
    N_al = _round_up(N, 16)
    K_al = _round_up(K, 128)
    B_al = _round_up(B, 128)

    # --- tile selection: minimize padding, keep the MXU fed ------------------
    tm = _pick_tile(N_al, (512, 384, 256, 128), full_cap=512)
    tk = _pick_tile(K_al, (2048, 1536, 1024, 512), full_cap=2048)
    # Safety: shrink tk if even a 128-wide output tile would blow the budget.
    while _vmem_needed(tm, tk, 128, tk) > budget and tk > 512:
        tk = max(512, _round_up(tk // 2, 128))

    # Output-column tile: prefer the full batch (A/W streamed from HBM exactly
    # once); otherwise the budget-fitting 128-multiple minimizing HBM traffic.
    tn_cands = []
    for c in (B_al, 4096, 2048, 1024, 512, 256, 128):
        if c <= B_al and c % 128 == 0 and c not in tn_cands:
            tn_cands.append(c)
    tn, best_cost = None, None
    for c in tn_cands:
        if _vmem_needed(tm, tk, c, tk) > budget:
            continue
        bp = _round_up(B_al, c)
        np_ = _round_up(N_al, tm)
        kp = _round_up(K_al, tk)
        cost = (2 * np_ * kp * 2 * (bp // c)    # A + W bytes, re-read per j block
                + kp * bp * 2 * (np_ // tm)     # x bytes, re-read per i block
                + np_ * bp * 4)                 # output writeback
        if best_cost is None or cost < best_cost:
            tn, best_cost = c, cost
    if tn is None:
        tn = 128

    Np = _round_up(N_al, tm)
    Kp = _round_up(K_al, tk)
    Bp = _round_up(B_al, tn)

    # Megacore: only when >=2 TensorCores are detected AND both parallel axes
    # would otherwise have a single block. Prefer splitting the batch axis
    # (keeps MXU row fill); never applied on single-TC v5e/v6e.
    if n_cores >= 2 and Np // tm == 1 and Bp // tn == 1:
        if tn >= 256 and tn % 256 == 0:
            tn //= 2
        elif tm >= 512 and tm % 256 == 0:
            tm //= 2

    # Keep x fully K-resident when the reduction is split and it fits VMEM.
    x_res = (Kp > tk) and (_vmem_needed(tm, tk, tn, Kp) <= budget)
    x_rows = Kp if x_res else tk

    bf16 = jnp.bfloat16
    A_p = _pad_cast(A, (Np, Kp), bf16)
    W_p = _pad_cast(W, (Np, Kp), bf16)
    x_p = _pad_cast(x, (Kp, Bp), bf16)

    grid = (Np // tm, Bp // tn, Kp // tk)

    needed = _vmem_needed(tm, tk, tn, x_rows)
    vmem_limit = int(min(max(2 * needed + (4 << 20), 32 << 20),
                         max(32 << 20, int(0.9 * vmem_cap))))

    cost = pl.CostEstimate(
        flops=2 * Np * Kp * Bp + Np * Kp,
        transcendentals=0,
        bytes_accessed=(2 * Np * Kp * 2 * (Bp // tn)   # A + W (bf16), re-read per j
                        + Kp * Bp * 2 * (Np // tm)     # x (bf16), re-read per i
                        + Np * Bp * 4),                # output (f32)
    )

    if x_res:
        x_spec = pl.BlockSpec((Kp, tn), lambda i, j, k: (0, j))
    else:
        x_spec = pl.BlockSpec((tk, tn), lambda i, j, k: (k, j))

    out = pl.pallas_call(
        functools.partial(_matriz_cerebral_kernel, tk=tk, x_k_resident=x_res),
        out_shape=jax.ShapeDtypeStruct((Np, Bp), jnp.float32),
        grid_spec=pltpu.PrefetchScalarGridSpec(
            num_scalar_prefetch=0,
            grid=grid,
            in_specs=[
                pl.BlockSpec((tm, tk), lambda i, j, k: (i, k)),  # A tile
                pl.BlockSpec((tm, tk), lambda i, j, k: (i, k)),  # W tile
                x_spec,                                          # x tile
            ],
            out_specs=pl.BlockSpec((tm, tn), lambda i, j, k: (i, j)),
        ),
        compiler_params=pltpu.CompilerParams(
            dimension_semantics=("parallel", "parallel", "arbitrary"),
            vmem_limit_bytes=vmem_limit,
        ),
        cost_estimate=cost,
    )(A_p, W_p, x_p)

    if (Np, Bp) != (N, B):
        out = out[:N, :B]
    return out.astype(x.dtype)


if __name__ == "__main__":
    # Small shapes consistent with the module: num_neuronios=128, batch cols=128.
    num_neuronios = 128
    batch = 128

    key = jax.random.PRNGKey(0)
    k_w, k_a, k_x = jax.random.split(key, 3)

    # Deterministic "parameters": W ~ randn, A ~ rand (matching torch init shapes).
    W = jax.random.normal(k_w, (num_neuronios, num_neuronios), dtype=jnp.float32)
    A = jax.random.uniform(k_a, (num_neuronios, num_neuronios), dtype=jnp.float32)
    x = jax.random.normal(k_x, (num_neuronios, batch), dtype=jnp.float32)

    out = jax.block_until_ready(matriz_cerebral_forward(A, W, x))
    assert out.shape == (num_neuronios, batch)
    assert out.dtype == x.dtype

    # Reference 1: matches the kernel numerics (bf16 operands, f32 accumulate).
    Ab, Wb, xb = (t.astype(jnp.bfloat16) for t in (A, W, x))
    conex = (Ab.astype(jnp.float32) * Wb.astype(jnp.float32)).astype(jnp.bfloat16)
    ref_bf16 = jnp.maximum(
        jnp.dot(conex, xb, preferred_element_type=jnp.float32), 0.0)
    assert jnp.allclose(out, ref_bf16, atol=1e-2, rtol=1e-2)

    # Reference 2: full-f32 PyTorch semantics (looser — bf16 operand rounding).
    ref_f32 = jnp.maximum((A * W) @ x, 0.0)
    assert jnp.allclose(out, ref_f32, atol=3e-1, rtol=3e-2)

    print("KERNEL_OK")
</pallas_src>

<mosaic_0001>
module attributes {stable_mosaic.version = 11 : i64} {
  func.func @_matriz_cerebral_kernel(%arg0: i32, %arg1: i32, %arg2: i32, %arg3: memref<128x128xbf16, #tpu.memory_space<vmem>>, %arg4: memref<128x128xbf16, #tpu.memory_space<vmem>>, %arg5: memref<128x128xbf16, #tpu.memory_space<vmem>>, %arg6: memref<128x128xf32, #tpu.memory_space<vmem>>) attributes {dimension_semantics = [#tpu.dimension_semantics<parallel>, #tpu.dimension_semantics<parallel>, #tpu.dimension_semantics<arbitrary>], iteration_bounds = array<i64: 1, 1, 1>, scalar_prefetch = 0 : i64, scratch_operands = 0 : i64, tpu.core_type = #tpu.core_type<tc>, window_params = [{transform_indices = @transform_0, window_bounds = array<i64: 128, 128>}, {transform_indices = @transform_1, window_bounds = array<i64: 128, 128>}, {transform_indices = @transform_2, window_bounds = array<i64: 128, 128>}, {transform_indices = @transform_3, window_bounds = array<i64: 128, 128>}]} {
    %c0_i32 = arith.constant 0 : i32
    %0 = arith.cmpi eq, %arg2, %c0_i32 : i32
    %1 = arith.extui %0 : i1 to i32
    %c0_i32_0 = arith.constant 0 : i32
    %2 = arith.cmpi ne, %1, %c0_i32_0 : i32
    scf.if %2 {
      %cst_12 = arith.constant 0.000000e+00 : f32
      %17 = vector.broadcast %cst_12 : f32 to vector<128x128xf32>
      %c0_13 = arith.constant 0 : index
      %c0_14 = arith.constant 0 : index
      %18 = vector.load %arg6[%c0_13, %c0_14] : memref<128x128xf32, #tpu.memory_space<vmem>>, vector<128x128xf32>
      tpu.vector_store %arg6[%c0_13, %c0_14], %17 {strides = array<i32>} : memref<128x128xf32, #tpu.memory_space<vmem>>, vector<128x128xf32>,
    } else {
    }
    %c0 = arith.constant 0 : index
    %c0_1 = arith.constant 0 : index
    %3 = vector.load %arg3[%c0, %c0_1] : memref<128x128xbf16, #tpu.memory_space<vmem>>, vector<128x128xbf16>
    %4 = arith.extf %3 : vector<128x128xbf16> to vector<128x128xf32>
    %c0_2 = arith.constant 0 : index
    %c0_3 = arith.constant 0 : index
    %5 = vector.load %arg4[%c0_2, %c0_3] : memref<128x128xbf16, #tpu.memory_space<vmem>>, vector<128x128xbf16>
    %6 = arith.extf %5 : vector<128x128xbf16> to vector<128x128xf32>
    %7 = arith.mulf %4, %6 : vector<128x128xf32>
    %8 = arith.truncf %7 : vector<128x128xf32> to vector<128x128xbf16>
    %c0_4 = arith.constant 0 : index
    %c0_5 = arith.constant 0 : index
    %9 = vector.load %arg5[%c0_4, %c0_5] : memref<128x128xbf16, #tpu.memory_space<vmem>>, vector<128x128xbf16>
    %c0_6 = arith.constant 0 : index
    %c0_7 = arith.constant 0 : index
    %10 = vector.load %arg6[%c0_6, %c0_7] : memref<128x128xf32, #tpu.memory_space<vmem>>, vector<128x128xf32>
    %cst = arith.constant dense<0.000000e+00> : vector<128x128xf32>
    %11 = tpu.matmul %8, %9, %cst {dimension_numbers = #tpu.dot_dimension_numbers<[1], [0], [0], [1], [0, 0, 1, 1], [], []>} : vector<128x128xbf16>, vector<128x128xbf16>, vector<128x128xf32> -> vector<128x128xf32>
    %12 = arith.addf %10, %11 : vector<128x128xf32>
    %c0_8 = arith.constant 0 : index
    %c0_9 = arith.constant 0 : index
    %13 = vector.load %arg6[%c0_8, %c0_9] : memref<128x128xf32, #tpu.memory_space<vmem>>, vector<128x128xf32>
    tpu.vector_store %arg6[%c0_8, %c0_9], %12 {strides = array<i32>} : memref<128x128xf32, #tpu.memory_space<vmem>>, vector<128x128xf32>,
    %c0_i32_10 = arith.constant 0 : i32
    %14 = arith.cmpi eq, %arg2, %c0_i32_10 : i32
    %15 = arith.extui %14 : i1 to i32
    %c0_i32_11 = arith.constant 0 : i32
    %16 = arith.cmpi ne, %15, %c0_i32_11 : i32
    scf.if %16 {
      %c0_12 = arith.constant 0 : index
      %c0_13 = arith.constant 0 : index
      %17 = vector.load %arg6[%c0_12, %c0_13] : memref<128x128xf32, #tpu.memory_space<vmem>>, vector<128x128xf32>
      %cst_14 = arith.constant 0.000000e+00 : f32
      %18 = vector.broadcast %cst_14 : f32 to vector<128x128xf32>
      %19 = arith.maximumf %17, %18 : vector<128x128xf32>
      %c0_15 = arith.constant 0 : index
      %c0_16 = arith.constant 0 : index
      %20 = vector.load %arg6[%c0_15, %c0_16] : memref<128x128xf32, #tpu.memory_space<vmem>>, vector<128x128xf32>
      tpu.vector_store %arg6[%c0_15, %c0_16], %19 {strides = array<i32>} : memref<128x128xf32, #tpu.memory_space<vmem>>, vector<128x128xf32>,
    } else {
    }
    return
  }
  func.func @transform_0(%arg0: i32, %arg1: i32, %arg2: i32) -> (i32, i32) {
    %c0_i32 = arith.constant 0 : i32
    return %arg0, %arg2 : i32, i32
  }
  func.func @transform_1(%arg0: i32, %arg1: i32, %arg2: i32) -> (i32, i32) {
    %c0_i32 = arith.constant 0 : i32
    return %arg0, %arg2 : i32, i32
  }
  func.func @transform_2(%arg0: i32, %arg1: i32, %arg2: i32) -> (i32, i32) {
    %c0_i32 = arith.constant 0 : i32
    return %arg2, %arg1 : i32, i32
  }
  func.func @transform_3(%arg0: i32, %arg1: i32, %arg2: i32) -> (i32, i32) {
    %c0_i32 = arith.constant 0 : i32
    return %arg0, %arg1 : i32, i32
  }
}

</mosaic_0001>

<bundles_post_ra>
// kernel: tpu_custom_call.1
= control target key start
LH: loop header
LB: loop body
LE: loop exit
PB: predicated region body
PF: predicated region fallthrough
CT: control target
= control target key end

     0   :  { %8 = vsyncpa [#allocation3], 0  ;;  %s695_s0 = inlined_call_operand.hbm [shape: bf16[128,128], index: 0, kind: input, shape index: {}]   ;;  %s696_s1 = inlined_call_operand.hbm [shape: bf16[128,128], index: 1, kind: input, shape index: {}]   ;;  %s697_s2 = inlined_call_operand.hbm [shape: bf16[128,128], index: 2, kind: input, shape index: {}]   ;;  %s698_s3 = inlined_call_operand.hbm [shape: f32[128,128], index: 3, kind: output, shape index: {}]  }
   0x1   :  { %9 = vsyncpa [#allocation6], 0 }
   0x2   :  { %10 = vsyncpa [#allocation4], 0  ;;  %s28_s14 = sshll.u32 %s696_s1, 4  ;;  %s655_s15 = smov [#allocation5]   ;;  %s29_s14 = int_to_ptr.hbm [resolvable:$true] %s28_s14 }
   0x3   :  { %s30_s16 = sshll.u32 %s655_s15, 4  ;;  %s15_s19 = sshll.u32 %s695_s0, 4  ;;  %s31_s16 = int_to_ptr.vmem [resolvable:$true] %s30_s16  ;;  %s16_s19 = int_to_ptr.hbm [resolvable:$true] %s15_s19 }
   0x4   :  { %s656_s20 = smov 64   ;;  %s657_s21 = smov 4  }
   0x5   :  { %36 = dma.hbm_to_vmem [thread:$0]  %s29_s14, 1024, %s31_s16, [#allocation6], %s656_s20, %s656_s20, %s657_s21  }
   0x6   :  { %s658_s22 = smov [#allocation2]   ;;  %s41_s26 = sshll.u32 %s697_s2, 4  ;;  %s42_s26 = int_to_ptr.hbm [resolvable:$true] %s41_s26 }
   0x7   :  { %s17_s23 = sshll.u32 %s658_s22, 4  ;;  %s659_s1 = smov [#allocation7]   ;;  %s18_s23 = int_to_ptr.vmem [resolvable:$true] %s17_s23 }
   0x8   :  { %23 = dma.hbm_to_vmem [thread:$0]  %s16_s19, 1024, %s18_s23, [#allocation3], %s656_s20, %s656_s20, %s657_s21  }
   0x9   :  { %s43_s27 = sshll.u32 %s659_s1, 4  ;;  %s44_s27 = int_to_ptr.vmem [resolvable:$true] %s43_s27 }
   0xa   :  { %49 = dma.hbm_to_vmem [thread:$0]  %s42_s26, 1024, %s44_s27, [#allocation6], %s656_s20, %s656_s20, %s657_s21  }
   0xb   :  { %649 = dma.done.wait [#allocation3], 1024  }
   0xc   :  { %650 = vsyncadd [#allocation3], 4294966272 }
   0xd   :  { %651 = dma.done.wait [#allocation6], 2048  }
   0xe   :  { %652 = vsyncadd [#allocation6], 4294965248  ;;  %v441_v0 = vld [vmem:[#allocation7 + $0x38] sm:$0xff]  ;;  %v440_v1 = vld [vmem:[#allocation7 + $0x30] sm:$0xff]  ;;  %s660_s0 = smov [#allocation8]   ;;  %s388_s30 = sshll.u32 %s698_s3, 4  ;;  %s389_s30 = int_to_ptr.hbm [resolvable:$true] %s388_s30 }
   0xf   :  { %250 = vmatpush.bf16.msra.mxu0 %v441_v0  ;;  %520 = vmatpush.bf16.msra.mxu1 %v441_v0  ;;  %v439_v2 = vld [vmem:[#allocation7 + $0x28] sm:$0xff]  ;;  %v438_v3 = vld [vmem:[#allocation7 + $0x20] sm:$0xff]  ;;  %v437_v4 = vld [vmem:[#allocation7 + $0x18] sm:$0xff]  ;;  %s386_s2 = sshll.u32 %s660_s0, 4  ;;  %s661_s4 = smov 128   ;;  %s387_s2 = int_to_ptr.vmem [resolvable:$true] %s386_s2 }
  0x10   :  { %521 = vmatpush.bf16.msra.mxu2 %v441_v0  ;;  %522 = vmatpush.bf16.msra.mxu3 %v441_v0  ;;  %v443_v5 = vld [vmem:[#allocation2] sm:$0xff]   ;;  %v507_v7 = vld [vmem:[#allocation2 + $0x10] sm:$0xff]   ;;  %v435_v26 = vld [vmem:[#allocation7 + $0x8] sm:$0xff]  ;;  %s662_s5 = smov 8  }
  0x11   :  { %v475_v6 = vld [vmem:[#allocation5] sm:$0xff]   ;;  %v514_v8 = vld [vmem:[#allocation5 + $0x10] sm:$0xff]   ;;  %v444_v12 = vunpack.c.l.bf16 %v443_v5  ;;  %v445_v13 = vunpack.c.h.bf16 %v443_v5  ;;  %v452_v18 = vunpack.c.l.bf16 %v507_v7  ;;  %v453_v19 = vunpack.c.h.bf16 %v507_v7  ;;  %v506_v44 = vld [vmem:[#allocation2 + $0x8] sm:$0xff]  }
  0x12   :  { %v436_v9 = vld [vmem:[#allocation7 + $0x10] sm:$0xff]  ;;  %v509_v10 = vld [vmem:[#allocation2 + $0x20] sm:$0xff]   ;;  %v476_v14 = vunpack.c.l.bf16 %v475_v6  ;;  %v477_v15 = vunpack.c.h.bf16 %v475_v6  ;;  %v484_v20 = vunpack.c.l.bf16 %v514_v8  ;;  %v485_v21 = vunpack.c.h.bf16 %v514_v8  ;;  %v513_v45 = vld [vmem:[#allocation5 + $0x8] sm:$0xff]  }
  0x13   :  { %251 = vmatpush.bf16.msra.mxu0 %v440_v1  ;;  %523 = vmatpush.bf16.msra.mxu1 %v440_v1  ;;  %v516_v11 = vld [vmem:[#allocation5 + $0x20] sm:$0xff]   ;;  %v511_v16 = vld [vmem:[#allocation2 + $0x30] sm:$0xff]   ;;  %v460_v22 = vunpack.c.l.bf16 %v509_v10  ;;  %v461_v23 = vunpack.c.h.bf16 %v509_v10  ;;  %v508_v46 = vld [vmem:[#allocation2 + $0x18] sm:$0xff]   ;;  %v448_v50 = vunpack.c.l.bf16 %v506_v44  ;;  %v449_v51 = vunpack.c.h.bf16 %v506_v44 }
  0x14   :  { %524 = vmatpush.bf16.msra.mxu2 %v440_v1  ;;  %525 = vmatpush.bf16.msra.mxu3 %v440_v1  ;;  %v518_v17 = vld [vmem:[#allocation5 + $0x30] sm:$0xff]   ;;  %v492_v24 = vunpack.c.l.bf16 %v516_v11  ;;  %v493_v25 = vunpack.c.h.bf16 %v516_v11  ;;  %v468_v27 = vunpack.c.l.bf16 %v511_v16  ;;  %v469_v28 = vunpack.c.h.bf16 %v511_v16  ;;  %v434_v36 = vld [vmem:[#allocation7] sm:$0xff]  ;;  %v515_v47 = vld [vmem:[#allocation5 + $0x18] sm:$0xff]  }
  0x15   :  { %v500_v29 = vunpack.c.l.bf16 %v518_v17  ;;  %v501_v30 = vunpack.c.h.bf16 %v518_v17  ;;  %v146_v31 = vmul.f32 %v476_v14, %v444_v12  ;;  %v147_v32 = vmul.f32 %v477_v15, %v445_v13  ;;  %v510_v48 = vld [vmem:[#allocation2 + $0x28] sm:$0xff]   ;;  %v512_v54 = vld [vmem:[#allocation2 + $0x38] sm:$0xff]  }
  0x16   :  { %v150_v33 = vmul.f32 %v484_v20, %v452_v18  ;;  %v151_v34 = vmul.f32 %v485_v21, %v453_v19  ;;  %v154_v35 = vmul.f32 %v492_v24, %v460_v22  ;;  %v155_v37 = vmul.f32 %v493_v25, %v461_v23  ;;  %v517_v49 = vld [vmem:[#allocation5 + $0x28] sm:$0xff]   ;;  %v519_v55 = vld [vmem:[#allocation5 + $0x38] sm:$0xff]  }
  0x17   :  { %252 = vmatpush.bf16.msra.mxu0 %v439_v2  ;;  %526 = vmatpush.bf16.msra.mxu1 %v439_v2  ;;  %v158_v38 = vmul.f32 %v500_v29, %v468_v27  ;;  %v159_v39 = vmul.f32 %v501_v30, %v469_v28  ;;  %v162_v40 = vpack.c.bf16 %v147_v32, %v146_v31  ;;  %v480_v52 = vunpack.c.l.bf16 %v513_v45 }
  0x18   :  { %527 = vmatpush.bf16.msra.mxu2 %v439_v2  ;;  %528 = vmatpush.bf16.msra.mxu3 %v439_v2  ;;  %v164_v41 = vpack.c.bf16 %v151_v34, %v150_v33  ;;  %v166_v42 = vpack.c.bf16 %v155_v37, %v154_v35  ;;  %v481_v53 = vunpack.c.h.bf16 %v513_v45  ;;  %v456_v56 = vunpack.c.l.bf16 %v508_v46 }
  0x19   :  { %v168_v43 = vpack.c.bf16 %v159_v39, %v158_v38  ;;  %v457_v57 = vunpack.c.h.bf16 %v508_v46  ;;  %v488_v58 = vunpack.c.l.bf16 %v515_v47  ;;  %v489_v59 = vunpack.c.h.bf16 %v515_v47 }
  0x1a   :  { %v464_v60 = vunpack.c.l.bf16 %v510_v48  ;;  %v465_v61 = vunpack.c.h.bf16 %v510_v48  ;;  %v496_v62 = vunpack.c.l.bf16 %v517_v49  ;;  %v497_v63 = vunpack.c.h.bf16 %v517_v49 }
  0x1b   :  { %253 = vmatpush.bf16.msra.mxu0 %v438_v3  ;;  %529 = vmatpush.bf16.msra.mxu1 %v438_v3  ;;  %v472_v0 = vunpack.c.l.bf16 %v512_v54  ;;  %v473_v1 = vunpack.c.h.bf16 %v512_v54  ;;  %v504_v2 = vunpack.c.l.bf16 %v519_v55  ;;  %v149_v5 = vmul.f32 %v481_v53, %v449_v51 }
  0x1c   :  { %530 = vmatpush.bf16.msra.mxu2 %v438_v3  ;;  %531 = vmatpush.bf16.msra.mxu3 %v438_v3  ;;  %v505_v3 = vunpack.c.h.bf16 %v519_v55  ;;  %v152_v6 = vmul.f32 %v488_v58, %v456_v56  ;;  %v153_v7 = vmul.f32 %v489_v59, %v457_v57  ;;  %v156_v8 = vmul.f32 %v496_v62, %v464_v60 }
  0x1d   :  { %v160_v10 = vmul.f32 %v504_v2, %v472_v0 }
  0x1e   :  { %v161_v11 = vmul.f32 %v505_v3, %v473_v1  ;;  %v165_v13 = vpack.c.bf16 %v153_v7, %v152_v6 }
  0x1f   :  { %254 = vmatpush.bf16.msra.mxu0 %v437_v4  ;;  %532 = vmatpush.bf16.msra.mxu1 %v437_v4 }
  0x20   :  { %533 = vmatpush.bf16.msra.mxu2 %v437_v4  ;;  %534 = vmatpush.bf16.msra.mxu3 %v437_v4  ;;  %v148_v4 = vmul.f32 %v480_v52, %v448_v50  ;;  %v169_v15 = vpack.c.bf16 %v161_v11, %v160_v10 }
  0x22   :  { %v163_v12 = vpack.c.bf16 %v149_v5, %v148_v4 }
  0x23   :  { %255 = vmatpush.bf16.msra.mxu0 %v436_v9  ;;  %535 = vmatpush.bf16.msra.mxu1 %v436_v9 }
  0x24   :  { %536 = vmatpush.bf16.msra.mxu2 %v436_v9  ;;  %537 = vmatpush.bf16.msra.mxu3 %v436_v9  ;;  %v157_v9 = vmul.f32 %v497_v63, %v465_v61 }
  0x26   :  { %v167_v14 = vpack.c.bf16 %v157_v9, %v156_v8 }
  0x27   :  { %256 = vmatpush.bf16.msra.mxu0 %v435_v26  ;;  %538 = vmatpush.bf16.msra.mxu1 %v435_v26 }
  0x28   :  { %539 = vmatpush.bf16.msra.mxu2 %v435_v26  ;;  %540 = vmatpush.bf16.msra.mxu3 %v435_v26 }
  0x2b   :  { %257 = vmatpush.bf16.msra.mxu0 %v434_v36  ;;  %541 = vmatpush.bf16.msra.mxu1 %v434_v36 }
  0x2c   :  { %542 = vmatpush.bf16.msra.mxu2 %v434_v36  ;;  %543 = vmatpush.bf16.msra.mxu3 %v434_v36 }
  0x2e   :  { %258 = vmatmul.bf16.vlgmr.msra.gmra.mxu0 %v162_v40  ;;  %268 = vmatmul.bf16.vlgmr.msra.gmra.mxu1 %v164_v41 }
  0x2f   :  { %278 = vmatmul.bf16.vlgmr.msra.gmra.mxu2 %v166_v42  ;;  %288 = vmatmul.bf16.vlgmr.msra.gmra.mxu3 %v168_v43 }
  0x3e   :  { %263 = vmatmul.bf16.gmra.mxu0 %v163_v12  ;;  %273 = vmatmul.bf16.gmra.mxu1 %v165_v13 }
  0x3f   :  { %283 = vmatmul.bf16.gmra.mxu2 %v167_v14  ;;  %293 = vmatmul.bf16.gmra.mxu3 %v169_v15 }
  0xab   :  { %v259_v16 = vpop.f32.mrf.mxu0  ;;  %v269_v17 = vpop.f32.mrf.mxu1 }
  0xac   :  { %v350_v18 = vmax.f32 %v259_v16, 0.0  ;;  %v354_v19 = vmax.f32 %v269_v17, 0.0 }
  0xae   :  { %366 = vst [vmem:[#allocation8] sm:$0xff] %v350_v18 }
  0xaf   :  { %370 = vst [vmem:[#allocation8 + $0x20] sm:$0xff] %v354_v19 }
  0xb2   :  { %v279_v20 = vpop.f32.mrf.mxu2  ;;  %v289_v21 = vpop.f32.mrf.mxu3 }
  0xb3   :  { %v261_v22 = vpop.f32.mrf.mxu0  ;;  %v271_v23 = vpop.f32.mrf.mxu1  ;;  %v358_v24 = vmax.f32 %v279_v20, 0.0  ;;  %v362_v25 = vmax.f32 %v289_v21, 0.0 }
  0xb4   :  { %v351_v26 = vmax.f32 %v261_v22, 0.0  ;;  %v355_v27 = vmax.f32 %v271_v23, 0.0 }
  0xb5   :  { %374 = vst [vmem:[#allocation8 + $0x40] sm:$0xff] %v358_v24 }
  0xb6   :  { %378 = vst [vmem:[#allocation8 + $0x60] sm:$0xff] %v362_v25 }
  0xb7   :  { %367 = vst [vmem:[#allocation8 + $0x8] sm:$0xff] %v351_v26 }
  0xb8   :  { %371 = vst [vmem:[#allocation8 + $0x28] sm:$0xff] %v355_v27 }
  0xba   :  { %v281_v28 = vpop.f32.mrf.mxu2  ;;  %v291_v29 = vpop.f32.mrf.mxu3 }
  0xbb   :  { %v264_v30 = vpop.f32.mrf.mxu0  ;;  %v274_v31 = vpop.f32.mrf.mxu1  ;;  %v359_v32 = vmax.f32 %v281_v28, 0.0  ;;  %v363_v33 = vmax.f32 %v291_v29, 0.0 }
  0xbc   :  { %v352_v34 = vmax.f32 %v264_v30, 0.0  ;;  %v356_v35 = vmax.f32 %v274_v31, 0.0 }
  0xbd   :  { %375 = vst [vmem:[#allocation8 + $0x48] sm:$0xff] %v359_v32 }
  0xbe   :  { %379 = vst [vmem:[#allocation8 + $0x68] sm:$0xff] %v363_v33 }
  0xbf   :  { %368 = vst [vmem:[#allocation8 + $0x10] sm:$0xff] %v352_v34 }
  0xc0   :  { %372 = vst [vmem:[#allocation8 + $0x30] sm:$0xff] %v356_v35 }
  0xc2   :  { %v284_v36 = vpop.f32.mrf.mxu2  ;;  %v294_v37 = vpop.f32.mrf.mxu3 }
  0xc3   :  { %v266_v38 = vpop.f32.mrf.mxu0  ;;  %v276_v39 = vpop.f32.mrf.mxu1  ;;  %v360_v40 = vmax.f32 %v284_v36, 0.0  ;;  %v364_v41 = vmax.f32 %v294_v37, 0.0 }
  0xc4   :  { %v353_v42 = vmax.f32 %v266_v38, 0.0  ;;  %v357_v43 = vmax.f32 %v276_v39, 0.0 }
  0xc5   :  { %376 = vst [vmem:[#allocation8 + $0x50] sm:$0xff] %v360_v40 }
  0xc6   :  { %380 = vst [vmem:[#allocation8 + $0x70] sm:$0xff] %v364_v41 }
  0xc7   :  { %369 = vst [vmem:[#allocation8 + $0x18] sm:$0xff] %v353_v42 }
  0xc8   :  { %373 = vst [vmem:[#allocation8 + $0x38] sm:$0xff] %v357_v43 }
  0xca   :  { %v286_v44 = vpop.f32.mrf.mxu2  ;;  %v296_v45 = vpop.f32.mrf.mxu3 }
  0xcb   :  { %v361_v46 = vmax.f32 %v286_v44, 0.0  ;;  %v365_v47 = vmax.f32 %v296_v45, 0.0 }
  0xcd   :  { %377 = vst [vmem:[#allocation8 + $0x58] sm:$0xff] %v361_v46 }
  0xce   :  { %381 = vst [vmem:[#allocation8 + $0x78] sm:$0xff] %v365_v47 }
  0xcf   :  { %394 = dma.vmem_to_hbm [thread:$0]  %s387_s2, 2048, %s389_s30, [#allocation4], %s661_s4, %s661_s4, %s662_s5  }
  0xd0   :  { %653 = dma.done.wait [#allocation4], 2048  }
  0xd1   :  { %654 = vsyncadd [#allocation4], 4294965248 }
  0xd2   :  { %399 = vsyncpa [#allocation3], 1 }
  0xd3   :  { %400 = vsyncpa [#allocation6], 1 }
  0xd4   :  { %401 = vsyncpa [#allocation4], 1 }

</bundles_post_ra>
